<compile_context>
chip_gen: v7x
topology: tpu7x:2x2x1
jax: 0.10.0
libtpu: 0.0.40
codegen_flags: <defaults>
</compile_context>

<pallas_src>
import numpy as np
import jax
import jax.numpy as jnp
from jax.experimental import pallas as pl
from jax.experimental.pallas import tpu as pltpu


_TARGET_BLOCK_BYTES = 2 * 1024 * 1024    # ~2 MiB/step: >=85% of copy roofline
_VMEM_LIMIT_BYTES = 32 * 1024 * 1024     # safe scoped VMEM on v5e/v6e/v7x


def _copy_kernel(x_ref, o_ref):
    # Path A: the channel-shuffle permutation is carried entirely by the
    # in/out BlockSpec index maps (DMA-side gather/scatter); body is a copy.
    o_ref[...] = x_ref[...]


def _shuffle_kernel(x_ref, o_ref):
    # Path B: x_ref is (nb, g, cpg, HW), o_ref is (nb, cpg, g, HW).
    # Unrolled static loop over the smaller channel axis; each statement moves
    # a full (nb, max(g,cpg), HW) slab.  This VMEM relayout is copy work that
    # hides under the next block's HBM DMA (VPU/MXU are idle in this kernel).
    g = x_ref.shape[1]
    cpg = x_ref.shape[2]
    if g <= cpg:
        for j in range(g):
            o_ref[:, :, j, :] = x_ref[:, j, :, :]
    else:
        for i in range(cpg):
            o_ref[:, i, :, :] = x_ref[:, :, i, :]


def _largest_divisor_leq(n, limit, step=1):
    """Largest divisor of n that is <= limit and a multiple of step (or None)."""
    best = None
    d = step
    cap = min(n, limit)
    while d <= cap:
        if n % d == 0:
            best = d
        d += step
    return best


def channel_shuffle(x, g):
    """Pallas equivalent of CS(g).forward(x) for NCHW input x."""
    N, C, H, W = x.shape
    assert C % g == 0, (C, g)
    cpg = C // g
    HW = H * W
    itemsize = np.dtype(x.dtype).itemsize

    if g == 1 or cpg == 1:
        return x  # permutation is the identity

    if HW % 128 == 0:
        # ------- Path A: lane/sublane-dense DMA permutation via index maps ---
        S = HW // 128
        x5 = x.reshape(N, g, cpg, S, 128)                      # free reshape
        out_shape = jax.ShapeDtypeStruct((N, cpg, g, S, 128), x.dtype)

        # Channel dim kept whole inside a block vs. iterated by the grid.
        ch_blk, ch_grid = (cpg, g) if g <= cpg else (g, cpg)

        # HW chunking: block's last-two dims are (s_tile, 128) with s_tile a
        # multiple of 8 or the full S, so DMAs always move whole (8,128) tiles.
        full_bytes = ch_blk * S * 128 * itemsize
        if full_bytes <= 2 * _TARGET_BLOCK_BYTES:
            s_tile = S
        else:
            limit = max(1, (2 * _TARGET_BLOCK_BYTES) // (ch_blk * 128 * itemsize))
            s_tile = _largest_divisor_leq(S, limit, step=8) or S

        # Batch folding: if one channel-slab block is small, fold batch
        # elements so each grid step moves ~1-2 MiB (hides the ~0.35us/step).
        blk_bytes = ch_blk * s_tile * 128 * itemsize
        if N > 1 and blk_bytes < _TARGET_BLOCK_BYTES:
            limit = max(1, _TARGET_BLOCK_BYTES // blk_bytes)
            nb = _largest_divisor_leq(N, limit) or 1
        else:
            nb = 1

        grid = (N // nb, ch_grid, S // s_tile)
        if g <= cpg:
            # One group j per step: contiguous [cpg, s_tile, 128] read; the
            # output DMA scatters whole tiles with stride g on the channel axis.
            in_spec = pl.BlockSpec((nb, None, cpg, s_tile, 128),
                                   lambda n, j, s: (n, j, 0, s, 0))
            out_spec = pl.BlockSpec((nb, cpg, None, s_tile, 128),
                                    lambda n, j, s: (n, 0, j, s, 0))
        else:
            # One in-group index i per step: whole-tile strided gather on the
            # read side, contiguous [g, s_tile, 128] write on the store side.
            in_spec = pl.BlockSpec((nb, g, None, s_tile, 128),
                                   lambda n, i, s: (n, 0, i, s, 0))
            out_spec = pl.BlockSpec((nb, None, g, s_tile, 128),
                                    lambda n, i, s: (n, i, 0, s, 0))

        out = pl.pallas_call(
            _copy_kernel,
            out_shape=out_shape,
            grid_spec=pltpu.PrefetchScalarGridSpec(
                num_scalar_prefetch=0,
                grid=grid,
                in_specs=[in_spec],
                out_specs=out_spec,
            ),
            compiler_params=pltpu.CompilerParams(
                dimension_semantics=("parallel", "parallel", "parallel"),
                vmem_limit_bytes=_VMEM_LIMIT_BYTES),
        )(x5)
        return out.reshape(N, C, H, W)                          # free reshape

    # ------- Path B: HW not lane-aligned -> full-slab blocks, shuffle in VMEM -
    # Both HBM DMAs are full [C, HW] (x batch-fold) slabs (last-two block dims
    # equal the full array dims, so no masked sub-tile DMA); the permutation is
    # done in VMEM by _shuffle_kernel.
    # TODO(synk): very large C*HW with HW % 128 != 0 cannot be tiled further
    # under the (8,128)-or-full-dim rule; such shapes rely on the VMEM limit.
    x4 = x.reshape(N, g, cpg, HW)                               # free reshape
    out_shape = jax.ShapeDtypeStruct((N, cpg, g, HW), x.dtype)

    blk_bytes = C * HW * itemsize
    if N > 1 and blk_bytes < _TARGET_BLOCK_BYTES:
        limit = max(1, _TARGET_BLOCK_BYTES // blk_bytes)
        nb = _largest_divisor_leq(N, limit) or 1
    else:
        nb = 1

    out = pl.pallas_call(
        _shuffle_kernel,
        out_shape=out_shape,
        grid_spec=pltpu.PrefetchScalarGridSpec(
            num_scalar_prefetch=0,
            grid=(N // nb,),
            in_specs=[pl.BlockSpec((nb, g, cpg, HW), lambda n: (n, 0, 0, 0))],
            out_specs=pl.BlockSpec((nb, cpg, g, HW), lambda n: (n, 0, 0, 0)),
        ),
        compiler_params=pltpu.CompilerParams(
            dimension_semantics=("parallel",),
            vmem_limit_bytes=_VMEM_LIMIT_BYTES),
    )(x4)
    return out.reshape(N, C, H, W)                              # free reshape


# ---------------------------------------------------------------------------
# Pure-JAX reference (mirrors the PyTorch view/transpose/view exactly).
# ---------------------------------------------------------------------------
def _reference(x, g):
    N, C, H, W = x.shape
    cpg = C // g
    return (x.reshape(N, g, cpg, H, W)
             .transpose(0, 2, 1, 3, 4)
             .reshape(N, C, H, W))


if __name__ == "__main__":
    key = jax.random.PRNGKey(0)
    k1, k2, k3 = jax.random.split(key, 3)

    # Case 1: lane-aligned HW, g <= cpg  (Path A, contiguous read / strided write).
    x1 = jax.random.normal(k1, (2, 16, 16, 16), jnp.float32)
    o1 = jax.block_until_ready(channel_shuffle(x1, 4))
    assert o1.shape == x1.shape, o1.shape
    np.testing.assert_array_equal(np.asarray(o1), np.asarray(_reference(x1, 4)))

    # Case 2: lane-aligned HW, g > cpg  (Path A, strided read / contiguous write).
    x2 = jax.random.normal(k2, (2, 24, 8, 16), jnp.float32)
    o2 = jax.block_until_ready(channel_shuffle(x2, 8))
    assert o2.shape == x2.shape, o2.shape
    np.testing.assert_array_equal(np.asarray(o2), np.asarray(_reference(x2, 8)))

    # Case 3: HW not a multiple of 128  (Path B, contiguous DMAs + VMEM shuffle).
    x3 = jax.random.normal(k3, (2, 12, 7, 7), jnp.float32)
    o3 = jax.block_until_ready(channel_shuffle(x3, 3))
    assert o3.shape == x3.shape, o3.shape
    np.testing.assert_array_equal(np.asarray(o3), np.asarray(_reference(x3, 3)))

    print("KERNEL_OK")
</pallas_src>

<mosaic_0001>
module attributes {stable_mosaic.version = 11 : i64} {
  func.func @_copy_kernel(%arg0: i32, %arg1: i32, %arg2: i32, %arg3: memref<2x1x4x2x128xf32, #tpu.memory_space<vmem>>, %arg4: memref<2x4x1x2x128xf32, #tpu.memory_space<vmem>>) attributes {dimension_semantics = [#tpu.dimension_semantics<parallel>, #tpu.dimension_semantics<parallel>, #tpu.dimension_semantics<parallel>], iteration_bounds = array<i64: 1, 4, 1>, scalar_prefetch = 0 : i64, scratch_operands = 0 : i64, tpu.core_type = #tpu.core_type<tc>, window_params = [{transform_indices = @transform_0, window_bounds = array<i64: 2, 1, 4, 2, 128>}, {transform_indices = @transform_1, window_bounds = array<i64: 2, 4, 1, 2, 128>}]} {
    %c0 = arith.constant 0 : index
    %c0_0 = arith.constant 0 : index
    %c0_1 = arith.constant 0 : index
    %c0_2 = arith.constant 0 : index
    %c0_3 = arith.constant 0 : index
    %0 = vector.load %arg3[%c0, %c0_0, %c0_1, %c0_2, %c0_3] : memref<2x1x4x2x128xf32, #tpu.memory_space<vmem>>, vector<2x1x4x2x128xf32>
    %1 = vector.shape_cast %0 : vector<2x1x4x2x128xf32> to vector<2x4x2x128xf32>
    %c0_4 = arith.constant 0 : index
    %c0_5 = arith.constant 0 : index
    %c0_6 = arith.constant 0 : index
    %c0_7 = arith.constant 0 : index
    %c0_8 = arith.constant 0 : index
    %2 = vector.load %arg4[%c0_4, %c0_5, %c0_6, %c0_7, %c0_8] : memref<2x4x1x2x128xf32, #tpu.memory_space<vmem>>, vector<2x4x1x2x128xf32>
    %3 = vector.shape_cast %2 : vector<2x4x1x2x128xf32> to vector<2x4x2x128xf32>
    %4 = vector.shape_cast %1 : vector<2x4x2x128xf32> to vector<2x4x1x2x128xf32>
    tpu.vector_store %arg4[%c0_4, %c0_5, %c0_6, %c0_7, %c0_8], %4 {strides = array<i32>} : memref<2x4x1x2x128xf32, #tpu.memory_space<vmem>>, vector<2x4x1x2x128xf32>,
    return
  }
  func.func @transform_0(%arg0: i32, %arg1: i32, %arg2: i32) -> (i32, i32, i32, i32, i32) {
    %c0_i32 = arith.constant 0 : i32
    %c0_i32_0 = arith.constant 0 : i32
    %c0_i32_1 = arith.constant 0 : i32
    return %arg0, %arg1, %c0_i32, %arg2, %c0_i32_0 : i32, i32, i32, i32, i32
  }
  func.func @transform_1(%arg0: i32, %arg1: i32, %arg2: i32) -> (i32, i32, i32, i32, i32) {
    %c0_i32 = arith.constant 0 : i32
    %c0_i32_0 = arith.constant 0 : i32
    %c0_i32_1 = arith.constant 0 : i32
    return %arg0, %c0_i32, %arg1, %arg2, %c0_i32_0 : i32, i32, i32, i32, i32
  }
}

</mosaic_0001>

<bundles_post_ra>
// kernel: tpu_custom_call.1
= control target key start
LH: loop header
LB: loop body
LE: loop exit
PB: predicated region body
PF: predicated region fallthrough
CT: control target
= control target key end

     0   :  { %6 = vsyncpa [#allocation3], 0  ;;  %s660_s0 = inlined_call_operand.hbm [shape: f32[2,4,4,2,128], index: 0, kind: input, shape index: {}]   ;;  %s661_s1 = inlined_call_operand.hbm [shape: f32[2,4,4,2,128], index: 1, kind: output, shape index: {}]  }
   0x1   :  { %8 = vsyncpa [#allocation3 + $0x1], 0 }
   0x2   :  { %9 = vsyncpa [#allocation4], 0 }
   0x3   :  { %11 = vsyncpa [#allocation4 + $0x1], 0  ;;  %s511_s6 = smov 0   ;;  %s513_s7 = smov 0  }
   0x4   :  { %s515_s8 = smov 0   ;;  %s517_s9 = smov 0  }
   0x5   :  { %s519_s10 = smov 0   ;;  %s521_s11 = smov 0  }
   0x6 LB: > { %s317_s12 = sadd.s32 4294967295, %s489_s11   ;;  %s318_s13 = sadd.s32 4294967294, %s489_s11   ;;  %s489_s11 = sphi %s521_s11, %s17_s11   ;;  %s485_s10 = sphi %s519_s10, %s670_s10   ;;  %s481_s9 = sphi %s517_s9, %s669_s9   ;;  %s477_s8 = sphi %s515_s8, %s668_s8   ;;  %s473_s7 = sphi %s513_s7, %s667_s7   ;;  %s469_s6 = sphi %s511_s6, %s666_s6  }
   0x7   : > { %s32_s14 = sadd.s32 1, %s485_s10  ;;  %s47_s15 = sadd.s32 1, %s477_s8 }
   0x8   : > { %p34_p0 = scmp.ge.s32.totalorder %s32_s14, 4  ;;  %p54_p1 = scmp.ne.s32.totalorder %s477_s8, %s473_s7 }
   0x9   : > { %p55_p2 = scmp.eq.s32.totalorder %s489_s11, 0  ;;  %p60_p3 = scmp.ne.s32.totalorder %s473_s7, %s469_s6 }
   0xa   : > { %s672_s14 = smov (%p34_p0, %s32_s14), 0  ;;  %p61_p5 = scmp.eq.s32.totalorder %s317_s12, 0 }
   0xb   : > { %p552_p4 = por %p55_p2, %p54_p1  ;;  %s41_s17 = ssub.s32 %s485_s10, %s672_s14 }
   0xc   : > { %p88_p6 = scmp.eq.s32.totalorder %s317_s12, 3  ;;  %p45_p7 = scmp.eq.s32.totalorder %s41_s17, 0 }
   0xd   : > { %p558_p8 = por %p61_p5, %p60_p3  ;;  %p94_p10 = scmp.eq.s32.totalorder %s318_s13, 3 }
   0xe   : > { %p562_p9 = por %p88_p6, %p54_p1  ;;  %p320_p12 = scmp.ge.s32.totalorder %s489_s11, 4 }
   0xf   : > { %s567_s20 = scalar_select %p45_p7, %s477_s8, %s47_s15  }
  0x10   : > { %p569_p11 = por %p94_p10, %p60_p3  ;;  %110 = sbr.rel (%p320_p12) target bundleno = 36 (0x24), region = 16 }
  0x17   : > { %s114_s22 = sand.u32 1, %s477_s8   ;;  %s333_s23 = sshll.u32 %s485_s10, 7 }
  0x18   : > { %s321_s24 = sshll.u32 %s114_s22, 4  ;;  %s128_s27 = scalar_lea.hbm %s660_s0, %s333_s23 }
  0x19   : > { %s334_s28 = scalar_select %p552_p4, [#allocation0], [#allocation8] }
  0x1a   : > { %s118_s29 = scalar_lea.vmem [#allocation2], %s321_s24  ;;  %s491_s3 = smov 512  }
  0x1b   : > { %s141_s30 = sshll.u32 %s118_s29, 4  ;;  %s133_s2 = sld [smem:[%s334_s28]]   ;;  %s142_s30 = int_to_ptr.vmem [resolvable:$true] %s141_s30 }
  0x1c   : > { %335 = sst [smem:[#allocation7]] (%p552_p4), %s491_s3  ;;  %s492_s4 = smov 128  }
  0x1d   : > { %336 = sst [smem:[#allocation7 + $0x1]] (%p552_p4), %s492_s4  ;;  %s493_s5 = smov 4  }
  0x1e   : > { %337 = sst [smem:[#allocation7 + $0x2]] (%p552_p4), %s493_s5  ;;  %s494_s12 = smov 32  }
  0x1f   : > { %338 = sst [smem:[#allocation7 + $0x3]] (%p552_p4), %s494_s12  ;;  %s495_s15 = smov 2  }
  0x20   : > { %339 = sst [smem:[#allocation7 + $0x4]] (%p552_p4), %s494_s12  ;;  %s115_s23 = scalar_lea.sflag [#allocation3], %s114_s22 }
  0x21   : > { %s324_s13 = sshll.u32 %s133_s2, 26  ;;  %340 = sst [smem:[#allocation7 + $0x5]] (%p552_p4), %s495_s15 }
  0x22   : > { %s325_s17 = sadd.s32 134217728, %s324_s13  ;;  %s496_s24 = smov [#allocation6]  }
  0x23   : > { %341 = dma.general (%p552_p4), %s128_s27, 256, %s142_s30, %s115_s23, %s496_s24, [#allocation7], %s325_s17, 0  }
  0x24 PF: > { %p326_p13 = scmp.ge.s32.totalorder %s489_s11, 1  ;;  %p162_p0 = scmp.lt.s32.totalorder %s489_s11, 5 }
  0x26   : > { %p163_p1 = pnand %p326_p13, %p162_p0 }
  0x27   : > { %s598_s25 = sand.u32 (!%p163_p1), 1, %s473_s7  }
  0x28   : > { %166 = sbr.rel (%p163_p1) target bundleno = 75 (0x4b), region = 24  ;;  %s327_s26 = sshll.u32 (!%p163_p1), %s598_s25, 4 }
  0x29   : > { %s169_s28 = scalar_lea.sflag (!%p163_p1), [#allocation3], %s598_s25  ;;  %s172_s29 = scalar_lea.vmem (!%p163_p1), [#allocation2], %s327_s26 }
  0x2f   : > { %460 = dma.done.wait (%p558_p8), %s169_s28, 256  }
  0x30   : > { %462 = vsyncadd (%p558_p8), %s169_s28, 4294967040  ;;  %s190_s16 = scalar_lea.vmem [#allocation5], %s327_s26  ;;  %s330_s27 = sshll.u32 %s481_s9, 5  ;;  %v193_v0 = vld [vmem:[%s172_s29] sm:$0xff]   ;;  %v197_v1 = vld [vmem:[%s172_s29 + $0x8] sm:$0xff]  }
  0x31   : > { %s226_s22 = sshll.u32 %s190_s16, 4  ;;  %s612_s3 = scalar_lea.hbm %s661_s1, %s330_s27  ;;  %201 = vst [vmem:[%s190_s16] sm:$0xff] %v193_v0   ;;  %205 = vst [vmem:[%s190_s16 + $0x8] sm:$0xff] %v197_v1   ;;  %s607_s22 = int_to_ptr.vmem [resolvable:$true] %s226_s22 }
  0x32   : > { %s210_s18 = scalar_lea.sflag [#allocation4], %s598_s25  ;;  %s407_s4 = scalar_lea.vmem %s607_s22, 256 }
  0x33   : > { %p408_p2 = scmp.ne.s32.totalorder %s607_s22, %s407_s4  ;;  %s497_s9 = smov [#allocation5]  }
  0x34   : > { %s411_s5 = sshll.u32 %s497_s9, 4  ;;  %s412_s5 = int_to_ptr.vmem [resolvable:$false] %s411_s5 }
  0x35   : > { %p409_p3 = pnand %p408_p2, %p562_p9  ;;  %s413_s12 = scalar_lea.vmem %s412_s5, 512 }
  0x36   : > { %p414_p5 = scmp.lt.s32.totalorder %s607_s22, %s412_s5  ;;  %p415_p6 = scmp.lt.s32.totalorder %s413_s12, %s407_s4 }
  0x37   : > { %p410_p4 = pneg %p409_p3 }
  0x38   : > { %p416_p7 = por %p415_p6, %p414_p5 }
  0x3a   : > { %p417_p8 = pnand %p416_p7, %p410_p4 }
  0x3c   : > { %420 = shalt.err (!%p417_p8)
}
  0x3d   : > { %s421_s13 = scalar_lea.hbm %s612_s3, 256  ;;  %s425_s23 = scalar_lea.hbm %s661_s1, 1024 }
  0x3e   : > { %p422_p10 = scmp.ne.s32.totalorder %s612_s3, %s421_s13  ;;  %p426_p0 = scmp.lt.u32.totalorder %s612_s3, %s661_s1 }
  0x3f   : > { %p427_p1 = scmp.lt.u32.totalorder %s425_s23, %s421_s13  ;;  %p429_p3 = scmp.lt.u32.totalorder %s421_s13, %s612_s3 }
  0x40   : > { %p423_p12 = pnand %p422_p10, %p562_p9 }
  0x41   : > { %p428_p2 = por %p427_p1, %p426_p0 }
  0x42   : > { %p424_p13 = pneg %p423_p12 }
  0x43   : > { %p430_p4 = por %p429_p3, %p428_p2 }
  0x45   : > { %p431_p5 = pnand %p430_p4, %p424_p13 }
  0x47   : > { %434 = shalt.err (!%p431_p5)
}
  0x48   : > { %s498_s28 = smov 32   ;;  %s499_s29 = smov 128  }
  0x49   : > { %s500_s16 = smov 2  }
  0x4a   : > { %343 = dma.vmem_to_hbm [thread:$0]  (%p562_p9), %s607_s22, 256, %s612_s3, %s210_s18, %s498_s28, %s499_s29, %s500_s16  }
  0x4b PF: > { %p349_p6 = scmp.ge.s32.totalorder %s489_s11, 2  ;;  %s241_s27 = sand.u32 1, %s469_s6  }
  0x4c   : > { %s242_s30 = scalar_lea.sflag [#allocation4], %s241_s27 }
  0x4d   : > { %p346_p7 = pnand %p349_p6, %p569_p11 }
  0x4f   : > { %464 = dma.done.wait (!%p346_p7), %s242_s30, 256  }
  0x50   : > { %466 = vsyncadd (!%p346_p7), %s242_s30, 4294967040  ;;  %s17_s11 = sadd.s32 1, %s489_s11   ;;  %s666_s6 = smov %s473_s7 }
  0x51   : > { %p14_p8 = scmp.ge.s32.totalorder %s17_s11, 6   ;;  %s667_s7 = smov %s477_s8 }
  0x52   : > { %s668_s8 = smov %s567_s20  ;;  %s669_s9 = smov %s485_s10 }
  0x53   : > { %s670_s10 = smov %s672_s14  ;;  %16 = sbr.rel (!%p14_p8) target bundleno = 6 (0x6), region = 74 }
  0x5a   :  { %247 = vsyncpa [#allocation3], 1 }
  0x5b   :  { %249 = vsyncpa [#allocation3 + $0x1], 1 }
  0x5c   :  { %250 = vsyncpa [#allocation4], 1 }
  0x5d   :  { %252 = vsyncpa [#allocation4 + $0x1], 1 }

</bundles_post_ra>
